<compile_context>
chip_gen: v6e
topology: v6e:2x2x1
jax: 0.10.0
libtpu: 0.0.40
codegen_flags: <defaults>
</compile_context>

<pallas_src>
import jax
import jax.numpy as jnp
from jax.experimental import pallas as pl
from jax.experimental.pallas import tpu as pltpu


_LANE = 128          # lane width: pad feature/vocab dims to multiples of 128
_TOKEN_BLOCK = 128   # tokens gathered per grid step (multiple of 8 sublanes)
# Conservative resident-table budget: fits v7x's 64 MiB physical VMEM with room
# for double-buffered output blocks and the one-hot temporaries.
_TABLE_VMEM_BUDGET = 40 * 1024 * 1024


def _round_up(x, m):
    return ((x + m - 1) // m) * m


def _embed_block_kernel(ids_ref, table_ref, out_ref):
    """Gather T token embeddings via a one-hot matmul on the MXU.

    ids_ref:   (T, 1)         int32 token ids (clamped to [0, n_V) by wrapper).
    table_ref: (V_pad, D_pad) embedding table, VMEM-resident (constant index_map).
    out_ref:   (T, D_pad)     gathered rows for this token block.
    """
    ids = ids_ref[...]                                            # (T, 1)
    t = out_ref.shape[0]
    v_pad = table_ref.shape[0]
    vocab_iota = jax.lax.broadcasted_iota(jnp.int32, (t, v_pad), 1)
    onehot = (vocab_iota == ids).astype(table_ref.dtype)          # (T, V_pad)
    out_ref[...] = jnp.dot(
        onehot, table_ref[...], preferred_element_type=jnp.float32
    ).astype(out_ref.dtype)


def _gather_rows(flat_ids, table, *, token_block=_TOKEN_BLOCK):
    """Pallas gather: (N,) int32 ids x (n_V, n_d) table -> (N, n_d)."""
    n_v, n_d = table.shape
    n = flat_ids.shape[0]

    v_pad = _round_up(n_v, _LANE)
    d_pad = _round_up(n_d, _LANE)
    t = token_block
    n_pad = _round_up(max(n, 1), t)
    num_blocks = n_pad // t

    table_bytes = v_pad * d_pad * table.dtype.itemsize
    if table_bytes > _TABLE_VMEM_BUDGET:
        # TODO(synk): large-vocab path (memory_space=pl.ANY table + batched manual
        # pltpu.make_async_copy row DMAs, double-buffered).  Fall back to XLA gather.
        return jnp.take(table, jnp.clip(flat_ids, 0, n_v - 1), axis=0)

    ids = jnp.clip(flat_ids.astype(jnp.int32), 0, n_v - 1)
    ids_col = jnp.zeros((n_pad, 1), jnp.int32).at[:n, 0].set(ids)
    table_pad = jnp.zeros((v_pad, d_pad), table.dtype).at[:n_v, :n_d].set(table)

    vmem_limit = int(min(128 * 1024 * 1024, table_bytes + (32 << 20)))

    out_pad = pl.pallas_call(
        _embed_block_kernel,
        out_shape=jax.ShapeDtypeStruct((n_pad, d_pad), table.dtype),
        grid_spec=pltpu.PrefetchScalarGridSpec(
            num_scalar_prefetch=0,
            grid=(num_blocks,),
            in_specs=[
                pl.BlockSpec((t, 1), lambda i: (i, 0)),          # token-id block
                pl.BlockSpec((v_pad, d_pad), lambda i: (0, 0)),  # resident table
            ],
            out_specs=pl.BlockSpec((t, d_pad), lambda i: (i, 0)),
        ),
        compiler_params=pltpu.CompilerParams(
            dimension_semantics=("parallel",),
            vmem_limit_bytes=vmem_limit,
        ),
    )(ids_col, table_pad)

    return out_pad[:n, :n_d]


def glove_embedding_forward(ids, word_table):
    """GloveEmbedding.forward(input): (B, S) int32 -> (B, S, n_d)."""
    B, S = ids.shape
    n_d = word_table.shape[1]
    out = _gather_rows(ids.reshape(-1), word_table)
    return out.reshape(B, S, n_d)


def glove_mask_forward(ids, glove_mask):
    """GloveEmbedding.mask(input): (B, S) int32 -> (B, S, 1)."""
    B, S = ids.shape
    out = _gather_rows(ids.reshape(-1), glove_mask)
    return out.reshape(B, S, 1)


def glove_embedding_and_mask_forward(ids, word_table, glove_mask):
    """Fused forward() + mask(): one kernel gathers [word_table | mask] columns."""
    B, S = ids.shape
    n_v, n_d = word_table.shape
    fused = jnp.concatenate([word_table, glove_mask.astype(word_table.dtype)], axis=1)
    out = _gather_rows(ids.reshape(-1), fused)
    emb = out[:, :n_d].reshape(B, S, n_d)
    mask = out[:, n_d : n_d + 1].reshape(B, S, 1)
    return emb, mask


def make_glove_params(key, vocab_size, n_d):
    """Deterministic synthetic stand-in for init_word_table / __init__.

    word_table ~ U(-1, 1) of shape (vocab_size + 4, n_d)   (matches np.random.rand*2-1)
    glove_mask: (vocab_size + 4, 1), alternating 0/1 as a synthetic "found in GloVe" flag.
    """
    n_v = vocab_size + 4
    k_tab, _ = jax.random.split(key)
    word_table = jax.random.uniform(
        k_tab, (n_v, n_d), dtype=jnp.float32, minval=-1.0, maxval=1.0
    )
    glove_mask = (jnp.arange(n_v, dtype=jnp.int32) % 2).astype(jnp.float32)[:, None]
    return word_table, glove_mask


if __name__ == "__main__":
    key = jax.random.PRNGKey(0)
    k_param, k_ids = jax.random.split(key)

    # Small shapes consistent with the module: vocab of 28 words (+4 specials),
    # default GloVe dim n_d=50, batch=2, seq=8.
    vocab_size = 28
    n_d = 50
    B, S = 2, 8

    word_table, glove_mask = make_glove_params(k_param, vocab_size, n_d)
    n_V = word_table.shape[0]

    ids = jax.random.randint(k_ids, (B, S), minval=0, maxval=n_V, dtype=jnp.int32)

    # Plain forward() path.
    emb = glove_embedding_forward(ids, word_table)
    emb = jax.block_until_ready(emb)

    # Fused forward() + mask() path (single Pallas call for both lookups).
    emb_f, mask_f = glove_embedding_and_mask_forward(ids, word_table, glove_mask)
    emb_f = jax.block_until_ready(emb_f)
    mask_f = jax.block_until_ready(mask_f)

    # Reference checks against plain JAX gathers (nn.Embedding semantics).
    ref_emb = jnp.take(word_table, ids, axis=0)
    ref_mask = jnp.take(glove_mask, ids, axis=0)

    assert emb.shape == (B, S, n_d) and emb.dtype == jnp.float32
    assert mask_f.shape == (B, S, 1)
    assert jnp.allclose(emb, ref_emb, rtol=1e-5, atol=1e-5), "embedding gather mismatch"
    assert jnp.allclose(emb_f, ref_emb, rtol=1e-5, atol=1e-5), "fused embedding mismatch"
    assert jnp.allclose(mask_f, ref_mask, rtol=1e-5, atol=1e-5), "fused mask mismatch"

    print("KERNEL_OK")
</pallas_src>

<mosaic_0001>
module attributes {stable_mosaic.version = 11 : i64} {
  func.func @_embed_block_kernel(%arg0: i32, %arg1: memref<128x1xi32, #tpu.memory_space<vmem>>, %arg2: memref<128x128xf32, #tpu.memory_space<vmem>>, %arg3: memref<128x128xf32, #tpu.memory_space<vmem>>) attributes {dimension_semantics = [#tpu.dimension_semantics<parallel>], iteration_bounds = array<i64: 1>, scalar_prefetch = 0 : i64, scratch_operands = 0 : i64, tpu.core_type = #tpu.core_type<tc>, window_params = [{transform_indices = @transform_0, window_bounds = array<i64: 128, 1>}, {pipeline_mode = #tpu.pipeline_mode<synchronous>, transform_indices = @transform_1, window_bounds = array<i64: 128, 128>}, {transform_indices = @transform_2, window_bounds = array<i64: 128, 128>}]} {
    %c0 = arith.constant 0 : index
    %c0_0 = arith.constant 0 : index
    %0 = vector.load %arg1[%c0, %c0_0] : memref<128x1xi32, #tpu.memory_space<vmem>>, vector<128x1xi32>
    %1 = tpu.iota {dimensions = array<i32: 1>} : vector<128x128xi32>
    %2 = vector.broadcast %0 : vector<128x1xi32> to vector<128x128xi32>
    %3 = arith.cmpi eq, %1, %2 : vector<128x128xi32>
    %4 = arith.extui %3 : vector<128x128xi1> to vector<128x128xi32>
    %5 = arith.sitofp %4 : vector<128x128xi32> to vector<128x128xf32>
    %c0_1 = arith.constant 0 : index
    %c0_2 = arith.constant 0 : index
    %6 = vector.load %arg2[%c0_1, %c0_2] : memref<128x128xf32, #tpu.memory_space<vmem>>, vector<128x128xf32>
    %cst = arith.constant dense<0.000000e+00> : vector<128x128xf32>
    %7 = tpu.matmul %5, %6, %cst {dimension_numbers = #tpu.dot_dimension_numbers<[1], [0], [0], [1], [0, 0, 1, 1], [], []>} : vector<128x128xf32>, vector<128x128xf32>, vector<128x128xf32> -> vector<128x128xf32>
    %c0_3 = arith.constant 0 : index
    %c0_4 = arith.constant 0 : index
    %8 = vector.load %arg3[%c0_3, %c0_4] : memref<128x128xf32, #tpu.memory_space<vmem>>, vector<128x128xf32>
    tpu.vector_store %arg3[%c0_3, %c0_4], %7 {strides = array<i32>} : memref<128x128xf32, #tpu.memory_space<vmem>>, vector<128x128xf32>,
    return
  }
  func.func @transform_0(%arg0: i32) -> (i32, i32) {
    %c0_i32 = arith.constant 0 : i32
    %c0_i32_0 = arith.constant 0 : i32
    return %arg0, %c0_i32 : i32, i32
  }
  func.func @transform_1(%arg0: i32) -> (i32, i32) {
    %c0_i32 = arith.constant 0 : i32
    %c0_i32_0 = arith.constant 0 : i32
    %c0_i32_1 = arith.constant 0 : i32
    return %c0_i32, %c0_i32_0 : i32, i32
  }
  func.func @transform_2(%arg0: i32) -> (i32, i32) {
    %c0_i32 = arith.constant 0 : i32
    %c0_i32_0 = arith.constant 0 : i32
    return %arg0, %c0_i32 : i32, i32
  }
}

</mosaic_0001>

<bundles_post_ra>
// kernel: tpu_custom_call.1
= control target key start
LH: loop header
LB: loop body
LE: loop exit
PB: predicated region body
PF: predicated region fallthrough
CT: control target
= control target key end

     0   :  { %v500_v2 = vmov 0   ;;  %s619_s0 = inlined_call_operand.vmem [shape: s32[128,1], index: 0, kind: input, shape index: {}]   ;;  %s620_s1 = inlined_call_operand.vmem [shape: f32[128,128], index: 1, kind: input, shape index: {}]   ;;  %s621_s2 = inlined_call_operand.hbm [shape: f32[128,128], index: 2, kind: output, shape index: {}]  }
   0x1   :  { %v13_v0 = vld [vmem:[%s619_s0 + $0x8] sm:$0xff]  ;;  %v12_v1 = vld [vmem:[%s619_s0] sm:$0xff]  ;;  %477 = vset.pattern.permute.xlu1 %v500_v2  ;;  %476 = vset.pattern.permute.xlu0 %v500_v2  ;;  %v141_v5 = vld [vmem:[%s620_s1 + $0x78] sm:$0xff] }
   0x2   :  { %34 = vperm.xlu1 %477, %v13_v0   ;;  %31 = vperm.xlu0 %476, %v12_v1   ;;  %v21_v3 = vld [vmem:[%s619_s0 + $0x48] sm:$0xff]  ;;  %v20_v4 = vld [vmem:[%s619_s0 + $0x40] sm:$0xff]  ;;  %v140_v6 = vld [vmem:[%s620_s1 + $0x70] sm:$0xff] }
   0x3   :  { %v22_v7 = vld [vmem:[%s619_s0 + $0x50] sm:$0xff]  ;;  %383 = vmatprep.subr.mxu0 %v141_v5  ;;  %439 = vmatprep.subr.mxu1 %v141_v5  ;;  %v139_v9 = vld [vmem:[%s620_s1 + $0x68] sm:$0xff] }
   0x4   :  { %v14_v8 = vld [vmem:[%s619_s0 + $0x10] sm:$0xff]  ;;  %384 = vmatpush3.msra.mxu0 %v141_v5  ;;  %455 = vmatpush3.msra.mxu1 %v141_v5 }
   0x5   :  { %385 = vmatprep.subr.mxu0 %v140_v6  ;;  %440 = vmatprep.subr.mxu1 %v140_v6 }
   0x6   :  { %58 = vperm.xlu1 %477, %v21_v3   ;;  %55 = vperm.xlu0 %476, %v20_v4  }
   0xa   :  { %61 = vperm.xlu1 %477, %v22_v7   ;;  %37 = vperm.xlu0 %476, %v14_v8  }
   0xb   :  { %7 = vsyncpa [#allocation3], 0  ;;  %v23_v10 = vld [vmem:[%s619_s0 + $0x58] sm:$0xff]  ;;  %386 = vmatpush3.msra.mxu0 %v140_v6  ;;  %456 = vmatpush3.msra.mxu1 %v140_v6  ;;  %v138_v12 = vld [vmem:[%s620_s1 + $0x60] sm:$0xff]  ;;  %v28_v33 = vlaneseq  ;;  %v501_v37 = vmov 1.0  }
   0xc   :  { %v15_v11 = vld [vmem:[%s619_s0 + $0x18] sm:$0xff]  ;;  %387 = vmatprep.subr.mxu0 %v139_v9  ;;  %441 = vmatprep.subr.mxu1 %v139_v9  ;;  %v24_v14 = vld [vmem:[%s619_s0 + $0x60] sm:$0xff]  ;;  %v136_v16 = vld [vmem:[%s620_s1 + $0x50] sm:$0xff] }
   0xd   :  { %388 = vmatpush3.msra.mxu0 %v139_v9  ;;  %457 = vmatpush3.msra.mxu1 %v139_v9  ;;  %v137_v13 = vld [vmem:[%s620_s1 + $0x58] sm:$0xff]  ;;  %v16_v15 = vld [vmem:[%s619_s0 + $0x20] sm:$0xff]  ;;  %v25_v17 = vld [vmem:[%s619_s0 + $0x68] sm:$0xff]  ;;  %v29_v34 = vand.u32 127, %v28_v33 }
   0xe   :  { %64 = vperm.xlu1 %477, %v23_v10   ;;  %40 = vperm.xlu0 %476, %v15_v11   ;;  %v17_v18 = vld [vmem:[%s619_s0 + $0x28] sm:$0xff]  ;;  %v134_v20 = vld [vmem:[%s620_s1 + $0x40] sm:$0xff]  ;;  %v26_v21 = vld [vmem:[%s619_s0 + $0x70] sm:$0xff] }
   0xf   :  { %389 = vmatprep.subr.mxu0 %v138_v12  ;;  %442 = vmatprep.subr.mxu1 %v138_v12  ;;  %v135_v19 = vld [vmem:[%s620_s1 + $0x48] sm:$0xff]  ;;  %v18_v22 = vld [vmem:[%s619_s0 + $0x30] sm:$0xff]  ;;  %v133_v23 = vld [vmem:[%s620_s1 + $0x38] sm:$0xff] }
  0x10   :  { %390 = vmatpush3.msra.mxu0 %v138_v12  ;;  %458 = vmatpush3.msra.mxu1 %v138_v12  ;;  %v27_v24 = vld [vmem:[%s619_s0 + $0x78] sm:$0xff]  ;;  %v132_v26 = vld [vmem:[%s620_s1 + $0x30] sm:$0xff]  ;;  %v131_v27 = vld [vmem:[%s620_s1 + $0x28] sm:$0xff] }
  0x11   :  { %391 = vmatprep.subr.mxu0 %v137_v13  ;;  %443 = vmatprep.subr.mxu1 %v137_v13  ;;  %v19_v25 = vld [vmem:[%s619_s0 + $0x38] sm:$0xff]  ;;  %v130_v28 = vld [vmem:[%s620_s1 + $0x20] sm:$0xff]  ;;  %v128_v30 = vld [vmem:[%s620_s1 + $0x10] sm:$0xff] }
  0x12   :  { %67 = vperm.xlu1 %477, %v24_v14   ;;  %43 = vperm.xlu0 %476, %v16_v15   ;;  %v129_v29 = vld [vmem:[%s620_s1 + $0x18] sm:$0xff]  ;;  %v127_v31 = vld [vmem:[%s620_s1 + $0x8] sm:$0xff]  ;;  %v126_v32 = vld [vmem:[%s620_s1] sm:$0xff]  ;;  %s502_s1 = smov [#allocation2]  }
  0x13   :  { %392 = vmatpush3.msra.mxu0 %v137_v13  ;;  %459 = vmatpush3.msra.mxu1 %v137_v13  ;;  %s308_s16 = sshll.u32 %s502_s1, 4  ;;  %s309_s16 = int_to_ptr.vmem [resolvable:$true] %s308_s16 }
  0x14   :  { %393 = vmatprep.subr.mxu0 %v136_v16  ;;  %444 = vmatprep.subr.mxu1 %v136_v16  ;;  %s478_s17 = scalar_lea.vmem %s309_s16, 2048  ;;  %p483_p1 = scmp.lt.s32.totalorder %s309_s16, %s309_s16 }
  0x15   :  { %394 = vmatpush3.msra.mxu0 %v136_v16  ;;  %460 = vmatpush3.msra.mxu1 %v136_v16  ;;  %p479_p0 = scmp.ne.s32.totalorder %s309_s16, %s478_s17  ;;  %p484_p2 = scmp.lt.s32.totalorder %s478_s17, %s478_s17 }
  0x16   :  { %70 = vperm.xlu1 %477, %v25_v17   ;;  %46 = vperm.xlu0 %476, %v17_v18  }
  0x17   :  { %395 = vmatprep.subr.mxu0 %v135_v19  ;;  %445 = vmatprep.subr.mxu1 %v135_v19  ;;  %p485_p3 = por %p484_p2, %p483_p1 }
  0x18   :  { %396 = vmatpush3.msra.mxu0 %v135_v19  ;;  %461 = vmatpush3.msra.mxu1 %v135_v19 }
  0x19   :  { %397 = vmatprep.subr.mxu0 %v134_v20  ;;  %446 = vmatprep.subr.mxu1 %v134_v20  ;;  %p486_p4 = pnand %p485_p3, %p479_p0 }
  0x1a   :  { %73 = vperm.xlu1 %477, %v26_v21   ;;  %49 = vperm.xlu0 %476, %v18_v22  }
  0x1b   :  { %398 = vmatpush3.msra.mxu0 %v134_v20  ;;  %462 = vmatpush3.msra.mxu1 %v134_v20 }
  0x1c   :  { %399 = vmatprep.subr.mxu0 %v133_v23  ;;  %447 = vmatprep.subr.mxu1 %v133_v23 }
  0x1d   :  { %400 = vmatpush3.msra.mxu0 %v133_v23  ;;  %463 = vmatpush3.msra.mxu1 %v133_v23 }
  0x1e   :  { %76 = vperm.xlu1 %477, %v27_v24   ;;  %52 = vperm.xlu0 %476, %v19_v25  }
  0x1f   :  { %401 = vmatprep.subr.mxu0 %v132_v26  ;;  %448 = vmatprep.subr.mxu1 %v132_v26 }
  0x20   :  { %402 = vmatpush3.msra.mxu0 %v132_v26  ;;  %464 = vmatpush3.msra.mxu1 %v132_v26 }
  0x21   :  { %403 = vmatprep.subr.mxu0 %v131_v27  ;;  %449 = vmatprep.subr.mxu1 %v131_v27 }
  0x22   :  { %404 = vmatpush3.msra.mxu0 %v131_v27  ;;  %465 = vmatpush3.msra.mxu1 %v131_v27 }
  0x23   :  { %405 = vmatprep.subr.mxu0 %v130_v28  ;;  %450 = vmatprep.subr.mxu1 %v130_v28 }
  0x24   :  { %406 = vmatpush3.msra.mxu0 %v130_v28  ;;  %466 = vmatpush3.msra.mxu1 %v130_v28 }
  0x25   :  { %407 = vmatprep.subr.mxu0 %v129_v29  ;;  %451 = vmatprep.subr.mxu1 %v129_v29 }
  0x26   :  { %408 = vmatpush3.msra.mxu0 %v129_v29  ;;  %467 = vmatpush3.msra.mxu1 %v129_v29 }
  0x27   :  { %409 = vmatprep.subr.mxu0 %v128_v30  ;;  %452 = vmatprep.subr.mxu1 %v128_v30 }
  0x28   :  { %410 = vmatpush3.msra.mxu0 %v128_v30  ;;  %468 = vmatpush3.msra.mxu1 %v128_v30 }
  0x29   :  { %411 = vmatprep.subr.mxu0 %v127_v31  ;;  %453 = vmatprep.subr.mxu1 %v127_v31 }
  0x2a   :  { %412 = vmatpush3.msra.mxu0 %v127_v31  ;;  %469 = vmatpush3.msra.mxu1 %v127_v31 }
  0x2b   :  { %413 = vmatprep.subr.mxu0 %v126_v32  ;;  %454 = vmatprep.subr.mxu1 %v126_v32 }
  0x2c   :  { %414 = vmatpush3.msra.mxu0 %v126_v32  ;;  %470 = vmatpush3.msra.mxu1 %v126_v32 }
  0x7d   :  { %v35_v35 = vpop.permute.xlu1 %34  ;;  %v32_v36 = vpop.permute.xlu0 %31 }
  0x7e   :  { %vm79_vm0 = vcmp.eq.s32.totalorder %v29_v34, %v35_v35  ;;  %vm78_vm1 = vcmp.eq.s32.totalorder %v29_v34, %v32_v36 }
  0x7f   :  { %415 = vmatprep.mubr.msk.f32.mxu0 %vm78_vm1, %v501_v37 }
  0x80   :  { %416 = vmatmul.mubr.msk.f32.vlgmr.msra.gmra.mxu0 %vm79_vm0, %v501_v37 }
  0x81   :  { %v59_v38 = vpop.permute.xlu1 %58  ;;  %v56_v39 = vpop.permute.xlu0 %55 }
  0x82   :  { %vm87_vm2 = vcmp.eq.s32.totalorder %v29_v34, %v59_v38  ;;  %vm86_vm3 = vcmp.eq.s32.totalorder %v29_v34, %v56_v39 }
  0x83   :  { %427 = vmatprep.mubr.msk.f32.mxu1 %vm86_vm3, %v501_v37 }
  0x84   :  { %428 = vmatmul.mubr.msk.f32.vlgmr.msra.gmra.mxu1 %vm87_vm2, %v501_v37 }
  0x85   :  { %v62_v40 = vpop.permute.xlu1 %61  ;;  %v38_v41 = vpop.permute.xlu0 %37 }
  0x86   :  { %vm88_vm4 = vcmp.eq.s32.totalorder %v29_v34, %v62_v40  ;;  %vm80_vm5 = vcmp.eq.s32.totalorder %v29_v34, %v38_v41 }
  0x87   :  { %418 = vmatprep.mubr.msk.f32.mxu0 %vm80_vm5, %v501_v37  ;;  %430 = vmatprep.mubr.msk.f32.mxu1 %vm88_vm4, %v501_v37 }
  0x89   :  { %v65_v42 = vpop.permute.xlu1 %64  ;;  %v41_v43 = vpop.permute.xlu0 %40 }
  0x8a   :  { %vm89_vm6 = vcmp.eq.s32.totalorder %v29_v34, %v65_v42  ;;  %vm81_vm7 = vcmp.eq.s32.totalorder %v29_v34, %v41_v43 }
  0x8b   :  { %419 = vmatmul.mubr.msk.f32.gmra.mxu0 %vm81_vm7, %v501_v37  ;;  %431 = vmatmul.mubr.msk.f32.gmra.mxu1 %vm89_vm6, %v501_v37 }
  0x8d   :  { %v68_v44 = vpop.permute.xlu1 %67  ;;  %v44_v45 = vpop.permute.xlu0 %43 }
  0x8e   :  { %vm90_vm8 = vcmp.eq.s32.totalorder %v29_v34, %v68_v44  ;;  %vm82_vm9 = vcmp.eq.s32.totalorder %v29_v34, %v44_v45 }
  0x8f   :  { %421 = vmatprep.mubr.msk.f32.mxu0 %vm82_vm9, %v501_v37  ;;  %433 = vmatprep.mubr.msk.f32.mxu1 %vm90_vm8, %v501_v37 }
  0x91   :  { %v71_v46 = vpop.permute.xlu1 %70  ;;  %v47_v47 = vpop.permute.xlu0 %46 }
  0x92   :  { %vm91_vm10 = vcmp.eq.s32.totalorder %v29_v34, %v71_v46  ;;  %vm83_vm11 = vcmp.eq.s32.totalorder %v29_v34, %v47_v47 }
  0x93   :  { %422 = vmatmul.mubr.msk.f32.gmra.mxu0 %vm83_vm11, %v501_v37  ;;  %434 = vmatmul.mubr.msk.f32.gmra.mxu1 %vm91_vm10, %v501_v37 }
  0x95   :  { %v74_v48 = vpop.permute.xlu1 %73  ;;  %v50_v49 = vpop.permute.xlu0 %49 }
  0x96   :  { %vm92_vm12 = vcmp.eq.s32.totalorder %v29_v34, %v74_v48  ;;  %vm84_vm13 = vcmp.eq.s32.totalorder %v29_v34, %v50_v49 }
  0x97   :  { %424 = vmatprep.mubr.msk.f32.mxu0 %vm84_vm13, %v501_v37  ;;  %436 = vmatprep.mubr.msk.f32.mxu1 %vm92_vm12, %v501_v37 }
  0x99   :  { %v77_v50 = vpop.permute.xlu1 %76  ;;  %v53_v51 = vpop.permute.xlu0 %52 }
  0x9a   :  { %vm93_vm14 = vcmp.eq.s32.totalorder %v29_v34, %v77_v50  ;;  %vm85_vm15 = vcmp.eq.s32.totalorder %v29_v34, %v53_v51 }
  0x9b   :  { %425 = vmatmul.mubr.msk.f32.gmra.mxu0 %vm85_vm15, %v501_v37  ;;  %437 = vmatmul.mubr.msk.f32.gmra.mxu1 %vm93_vm14, %v501_v37 }
 0x140   :  { %v417_v52 = vpop.f32.mrf.mxu0 }
 0x141   :  { %288 = vst [vmem:[#allocation2 + $0x8] sm:$0xff] %v417_v52 }
 0x142   :  { %v208_v53 = vpop.f32.mrf.mxu0 }
 0x143   :  { %287 = vst [vmem:[#allocation2] sm:$0xff] %v208_v53 }
 0x144   :  { %v429_v54 = vpop.f32.mrf.mxu1 }
 0x145   :  { %296 = vst [vmem:[#allocation2 + $0x48] sm:$0xff] %v429_v54 }
 0x146   :  { %v248_v55 = vpop.f32.mrf.mxu1 }
 0x147   :  { %295 = vst [vmem:[#allocation2 + $0x40] sm:$0xff] %v248_v55 }
 0x14b   :  { %v420_v56 = vpop.f32.mrf.mxu0  ;;  %v432_v57 = vpop.f32.mrf.mxu1 }
 0x14c   :  { %290 = vst [vmem:[#allocation2 + $0x18] sm:$0xff] %v420_v56  ;;  %298 = vst [vmem:[#allocation2 + $0x58] sm:$0xff] %v432_v57 }
 0x14d   :  { %v218_v58 = vpop.f32.mrf.mxu0  ;;  %v258_v59 = vpop.f32.mrf.mxu1 }
 0x14e   :  { %289 = vst [vmem:[#allocation2 + $0x10] sm:$0xff] %v218_v58  ;;  %297 = vst [vmem:[#allocation2 + $0x50] sm:$0xff] %v258_v59 }
 0x153   :  { %v423_v60 = vpop.f32.mrf.mxu0  ;;  %v435_v61 = vpop.f32.mrf.mxu1 }
 0x154   :  { %292 = vst [vmem:[#allocation2 + $0x28] sm:$0xff] %v423_v60  ;;  %300 = vst [vmem:[#allocation2 + $0x68] sm:$0xff] %v435_v61 }
 0x155   :  { %v228_v62 = vpop.f32.mrf.mxu0  ;;  %v268_v63 = vpop.f32.mrf.mxu1 }
 0x156   :  { %291 = vst [vmem:[#allocation2 + $0x20] sm:$0xff] %v228_v62  ;;  %299 = vst [vmem:[#allocation2 + $0x60] sm:$0xff] %v268_v63 }
 0x15b   :  { %v426_v0 = vpop.f32.mrf.mxu0  ;;  %v438_v1 = vpop.f32.mrf.mxu1 }
 0x15c   :  { %294 = vst [vmem:[#allocation2 + $0x38] sm:$0xff] %v426_v0  ;;  %302 = vst [vmem:[#allocation2 + $0x78] sm:$0xff] %v438_v1 }
 0x15d   :  { %v238_v2 = vpop.f32.mrf.mxu0  ;;  %v278_v3 = vpop.f32.mrf.mxu1 }
 0x15e   :  { %293 = vst [vmem:[#allocation2 + $0x30] sm:$0xff] %v238_v2  ;;  %301 = vst [vmem:[#allocation2 + $0x70] sm:$0xff] %v278_v3 }
 0x15f   :  { %489 = shalt.err (!%p486_p4)
}
 0x160   :  { %s503_s18 = smov 128   ;;  %s504_s19 = smov 8  }
 0x161   :  { %314 = dma.vmem_to_hbm [thread:$0]  %s309_s16, 2048, %s621_s2, [#allocation3], %s503_s18, %s503_s18, %s504_s19  }
 0x162   :  { %498 = dma.done.wait [#allocation3], 2048  }
 0x163   :  { %499 = vsyncadd [#allocation3], 4294965248 }
 0x164   :  { %318 = vsyncpa [#allocation3], 1 }

</bundles_post_ra>
